<compile_context>
chip_gen: v7x
topology: tpu7x:2x2x1
jax: 0.10.0
libtpu: 0.0.40
codegen_flags: <defaults>
</compile_context>

<pallas_src>
import functools

import jax
import jax.numpy as jnp
from jax.experimental import pallas as pl
from jax.experimental.pallas import tpu as pltpu

_LANES = 128
_TARGET_BLOCK_BYTES = 8 * 1024 * 1024   # in+out bytes per grid step (x2 double buffers)
_SPLIT_MIN_BYTES = 4 * 1024 * 1024      # force 2 blocks (v7x dual-TC) only if each >= ~2 MiB
_PALLAS_MIN_BYTES = 256 * 1024          # below this, plain XLA fuses the op for free
_VMEM_LIMIT_BYTES = 48 * 1024 * 1024    # headroom under v7x's 64 MiB physical VMEM


def _multiply_kernel(x_ref, o_ref, *, factor):
    # Pure VPU elementwise multiply of the whole VMEM tile; explicit cast so
    # integer-input / float-factor promotion can never mismatch the output ref.
    o_ref[...] = (x_ref[...] * factor).astype(o_ref.dtype)


def multiply(x: jax.Array, factor=2, *, force_pallas: bool = False) -> jax.Array:
    """Pallas-TPU equivalent of MultiplyModule(factor)(x) = x * factor."""
    orig_shape = x.shape
    # Weak-typed promotion: f32*2 -> f32, i32*2 -> i32, i32*2.5 -> f32 (torch-like).
    out_dtype = jnp.result_type(x, factor)
    total = x.size

    if total == 0:  # degenerate: nothing to run on-chip
        return jnp.zeros(orig_shape, out_dtype)

    in_item = jnp.dtype(x.dtype).itemsize
    out_item = jnp.dtype(out_dtype).itemsize
    io_bytes = total * (in_item + out_item)

    # Small-input bypass: launch + reshape plumbing dominate; XLA fuses this for free.
    if not force_pallas and io_bytes < _PALLAS_MIN_BYTES:
        return (x * factor).astype(out_dtype)

    # Sublane alignment for the narrower dtype: 8 rows (32-bit), 16 (bf16), 32 (int8/fp8).
    sublane = max(8, 32 // min(in_item, out_item))

    # Flatten the whole tensor to a lane-dense (rows, 128) slab.
    rows = pl.cdiv(total, _LANES)

    # Byte-budgeted tile height, multiple of the sublane tile.
    bytes_per_row = _LANES * (in_item + out_item)
    tile_m = max(sublane, (_TARGET_BLOCK_BYTES // bytes_per_row) // sublane * sublane)
    # v7x has 2 TensorCores: force a 2-way split only when each block stays >= ~2 MiB,
    # so single-TC v5e/v6e never pay per-step overhead on small/medium inputs.
    if tile_m >= rows and rows * bytes_per_row >= _SPLIT_MIN_BYTES:
        tile_m = pl.cdiv(pl.cdiv(rows, 2), sublane) * sublane
    tile_m = min(tile_m, rows)
    # Ragged last block (rows % tile_m != 0) is masked by Pallas; block_shape stays
    # (8,128)-aligned (or equal to the full dim), so no padding of rows to tile_m.
    grid_m = pl.cdiv(rows, tile_m)

    # Pad the flat array only when the element count isn't lane-aligned (<=127 elems).
    xf = x.reshape(-1)
    padded_total = rows * _LANES
    if padded_total != total:
        xf = jnp.pad(xf, (0, padded_total - total))
    x2 = xf.reshape(rows, _LANES)

    # `factor` is a module constant -> hoisted closure (one compile per distinct factor).
    # TODO(synk): if `factor` ever becomes a traced per-call scalar, switch to
    # num_scalar_prefetch=1 with an SMEM scalar instead of this closure.
    kernel = functools.partial(_multiply_kernel, factor=factor)

    out = pl.pallas_call(
        kernel,
        out_shape=jax.ShapeDtypeStruct((rows, _LANES), out_dtype),
        grid_spec=pltpu.PrefetchScalarGridSpec(
            num_scalar_prefetch=0,
            grid=(grid_m,),
            in_specs=[pl.BlockSpec((tile_m, _LANES), lambda i: (i, 0))],
            out_specs=pl.BlockSpec((tile_m, _LANES), lambda i: (i, 0)),
        ),
        compiler_params=pltpu.CompilerParams(
            dimension_semantics=("parallel",),
            vmem_limit_bytes=_VMEM_LIMIT_BYTES,
            allow_input_fusion=[True],  # let XLA fuse the (rare, tiny) pad/reshape into the call
        ),
        cost_estimate=pl.CostEstimate(
            flops=total, transcendentals=0, bytes_accessed=io_bytes),
    )(x2)

    out = out.reshape(-1)
    if padded_total != total:
        out = out[:total]
    return out.reshape(orig_shape)


if __name__ == "__main__":
    factor = 2

    # Spec-sized input: (2, 4, 16, 16) flattens to an exact (16, 128) slab, no padding.
    x = jax.random.normal(jax.random.PRNGKey(0), (2, 4, 16, 16), dtype=jnp.float32)
    y = multiply(x, factor, force_pallas=True)          # exercise the Pallas path
    jax.block_until_ready(y)
    ref = x * factor
    assert y.shape == ref.shape and y.dtype == ref.dtype, "shape/dtype mismatch"
    assert jnp.allclose(y, ref), "mismatch vs reference (pallas path)"

    # Small-input XLA bypass path.
    y_b = multiply(x, factor)
    assert jnp.allclose(y_b, ref), "mismatch vs reference (bypass path)"

    # Lane-ragged shape: exercises the tiny tail pad + output slice.
    x_r = jax.random.normal(jax.random.PRNGKey(1), (3, 5, 129), dtype=jnp.float32)
    y_r = multiply(x_r, 3, force_pallas=True)
    jax.block_until_ready(y_r)
    assert jnp.allclose(y_r, x_r * 3), "mismatch vs reference (ragged path)"

    # Multi-block grid with a masked ragged last block (8320 rows, tile_m=8192), no padding.
    x_big = jax.random.normal(jax.random.PRNGKey(2), (1024, 1040), dtype=jnp.float32)
    y_big = multiply(x_big, factor)
    jax.block_until_ready(y_big)
    assert jnp.allclose(y_big, x_big * factor), "mismatch vs reference (multi-block path)"

    print("KERNEL_OK")
</pallas_src>

<mosaic_0001>
module attributes {stable_mosaic.version = 11 : i64} {
  func.func @_multiply_kernel(%arg0: i32, %arg1: memref<16x128xf32, #tpu.memory_space<vmem>>, %arg2: memref<16x128xf32, #tpu.memory_space<vmem>>) attributes {dimension_semantics = [#tpu.dimension_semantics<parallel>], iteration_bounds = array<i64: 1>, scalar_prefetch = 0 : i64, scratch_operands = 0 : i64, tpu.core_type = #tpu.core_type<tc>, window_params = [{transform_indices = @transform_0, window_bounds = array<i64: 16, 128>}, {transform_indices = @transform_1, window_bounds = array<i64: 16, 128>}]} {
    %c0 = arith.constant 0 : index
    %c0_0 = arith.constant 0 : index
    %0 = vector.load %arg1[%c0, %c0_0] : memref<16x128xf32, #tpu.memory_space<vmem>>, vector<16x128xf32>
    %cst = arith.constant 2.000000e+00 : f32
    %1 = vector.broadcast %cst : f32 to vector<16x128xf32>
    %2 = arith.mulf %0, %1 : vector<16x128xf32>
    %c0_1 = arith.constant 0 : index
    %c0_2 = arith.constant 0 : index
    %3 = vector.load %arg2[%c0_1, %c0_2] : memref<16x128xf32, #tpu.memory_space<vmem>>, vector<16x128xf32>
    tpu.vector_store %arg2[%c0_1, %c0_2], %2 {strides = array<i32>} : memref<16x128xf32, #tpu.memory_space<vmem>>, vector<16x128xf32>,
    return
  }
  func.func @transform_0(%arg0: i32) -> (i32, i32) {
    %c0_i32 = arith.constant 0 : i32
    %c0_i32_0 = arith.constant 0 : i32
    return %arg0, %c0_i32 : i32, i32
  }
  func.func @transform_1(%arg0: i32) -> (i32, i32) {
    %c0_i32 = arith.constant 0 : i32
    %c0_i32_0 = arith.constant 0 : i32
    return %arg0, %c0_i32 : i32, i32
  }
}

</mosaic_0001>

<bundles_post_ra>
// kernel: tpu_custom_call.1
= control target key start
LH: loop header
LB: loop body
LE: loop exit
PB: predicated region body
PF: predicated region fallthrough
CT: control target
= control target key end

     0   :  { %6 = vsyncpa [#allocation3], 0  ;;  %s136_s0 = inlined_call_operand.hbm [shape: f32[16,128], index: 0, kind: input, shape index: {}]   ;;  %s137_s1 = inlined_call_operand.hbm [shape: f32[16,128], index: 1, kind: output, shape index: {}]  }
   0x1   :  { %7 = vsyncpa [#allocation4], 0  ;;  %s98_s6 = smov [#allocation2]   ;;  %s50_s10 = scalar_lea.hbm %s136_s0, 256 }
   0x2   :  { %s13_s7 = sshll.u32 %s98_s6, 4  ;;  %p51_p0 = scmp.ne.s32.totalorder %s136_s0, %s50_s10  ;;  %s14_s7 = int_to_ptr.vmem [resolvable:$true] %s13_s7 }
   0x3   :  { %p54_p1 = scmp.lt.u32.totalorder %s50_s10, %s136_s0 }
   0x5   :  { %p56_p2 = pnand %p54_p1, %p51_p0 }
   0x7   :  { %59 = shalt.err (!%p56_p2)
}
   0x8   :  { %s60_s15 = scalar_lea.vmem %s14_s7, 256  ;;  %p65_p4 = scmp.lt.s32.totalorder %s14_s7, %s14_s7 }
   0x9   :  { %p61_p3 = scmp.ne.s32.totalorder %s14_s7, %s60_s15  ;;  %p66_p5 = scmp.lt.s32.totalorder %s60_s15, %s60_s15 }
   0xb   :  { %p67_p6 = por %p66_p5, %p65_p4 }
   0xd   :  { %p68_p7 = pnand %p67_p6, %p61_p3 }
   0xf   :  { %71 = shalt.err (!%p68_p7)
}
  0x10   :  { %s99_s16 = smov 128   ;;  %s100_s17 = smov 8  }
  0x11   :  { %19 = dma.hbm_to_vmem [thread:$0]  %s136_s0, 256, %s14_s7, [#allocation3], %s99_s16, %s99_s16, %s100_s17  }
  0x12   :  { %94 = dma.done.wait [#allocation3], 256  }
  0x13   :  { %95 = vsyncadd [#allocation3], 4294967040  ;;  %s101_s20 = smov [#allocation5]   ;;  %v23_v0 = vld [vmem:[#allocation2] sm:$0xff]  ;;  %v24_v1 = vld [vmem:[#allocation2 + $0x8] sm:$0xff] }
  0x14   :  { %s34_s21 = sshll.u32 %s101_s20, 4  ;;  %v25_v2 = vmul.f32 2.0, %v23_v0  ;;  %v26_v3 = vmul.f32 2.0, %v24_v1  ;;  %s35_s21 = int_to_ptr.vmem [resolvable:$true] %s34_s21 }
  0x15   :  { %s72_s22 = scalar_lea.vmem %s35_s21, 256  ;;  %p77_p9 = scmp.lt.s32.totalorder %s35_s21, %s35_s21 }
  0x16   :  { %27 = vst [vmem:[#allocation5] sm:$0xff] %v25_v2  ;;  %28 = vst [vmem:[#allocation5 + $0x8] sm:$0xff] %v26_v3  ;;  %p73_p8 = scmp.ne.s32.totalorder %s35_s21, %s72_s22  ;;  %p78_p10 = scmp.lt.s32.totalorder %s72_s22, %s72_s22 }
  0x18   :  { %p79_p11 = por %p78_p10, %p77_p9 }
  0x1a   :  { %p80_p12 = pnand %p79_p11, %p73_p8 }
  0x1c   :  { %83 = shalt.err (!%p80_p12)
}
  0x1d   :  { %s84_s24 = scalar_lea.hbm %s137_s1, 256 }
  0x1e   :  { %p85_p13 = scmp.ne.s32.totalorder %s137_s1, %s84_s24  ;;  %p88_p0 = scmp.lt.u32.totalorder %s84_s24, %s137_s1 }
  0x20   :  { %p90_p1 = pnand %p88_p0, %p85_p13 }
  0x22   :  { %93 = shalt.err (!%p90_p1)
}
  0x23   :  { %40 = dma.vmem_to_hbm [thread:$0]  %s35_s21, 256, %s137_s1, [#allocation4], %s99_s16, %s99_s16, %s100_s17  }
  0x24   :  { %96 = dma.done.wait [#allocation4], 256  }
  0x25   :  { %97 = vsyncadd [#allocation4], 4294967040 }
  0x26   :  { %44 = vsyncpa [#allocation3], 1 }
  0x27   :  { %45 = vsyncpa [#allocation4], 1 }

</bundles_post_ra>
